<compile_context>
chip_gen: v6e
topology: v6e:2x2x1
jax: 0.10.0
libtpu: 0.0.40
codegen_flags: <defaults>
</compile_context>

<pallas_src>
import functools
import math

import jax
import jax.numpy as jnp
from jax import lax
from jax.experimental import pallas as pl
from jax.experimental.pallas import tpu as pltpu


def _cdiv(a, b):
    return -(-a // b)


def _round_up(x, m):
    return _cdiv(x, m) * m


# ---------------------------------------------------------------------------
# Generation-aware VMEM sizing
# ---------------------------------------------------------------------------
def _tpu_vmem_capacity_bytes():
    """Physical VMEM per TensorCore; conservative (v7x-sized) fallback."""
    try:
        info = pltpu.get_tpu_info()
        cap = getattr(info, "vmem_capacity_bytes", None)
        if cap:
            return int(cap)
    except Exception:
        pass
    return 64 * 1024 * 1024


def _vmem_limit_bytes():
    # ~75% of physical: ~96 MiB on v5e/v6e (128 MiB VMEM), ~48 MiB on v7x.
    return int(min(96 * 1024 * 1024, (_tpu_vmem_capacity_bytes() * 3) // 4))


def _vmem_budget_bytes():
    # Tile-sizing budget: ~40% of physical VMEM (double-buffering + headroom).
    return int((_tpu_vmem_capacity_bytes() * 2) // 5)


def _min_row_tile(itemsize):
    # Minimum sublane tile by storage dtype: 8 (f32), 16 (bf16), 32 (int8/fp8).
    return {4: 8, 2: 16, 1: 32}.get(int(itemsize), 8)


def _pick_tm(M, per_row_bytes, *, resident_bytes=0, min_tile=8, target_tm=4096):
    """Largest row tile (power of two, multiple of min_tile, <= target) that
    fits the VMEM budget, capped so there are >= 2 grid steps (keeps both
    TensorCores busy on v7x; no effect on v5e/v6e)."""
    budget = max(_vmem_budget_bytes() - resident_bytes, min_tile * per_row_bytes)
    tm = min_tile
    for cand in (4096, 2048, 1024, 512, 256, 128, 64, 32, 16, 8):
        if cand < min_tile or cand % min_tile or cand > target_tm:
            continue
        if cand * per_row_bytes <= budget:
            tm = cand
            break
    while tm > min_tile and _cdiv(M, tm) < 2:
        tm = max(tm // 2, min_tile)
    return tm


# ---------------------------------------------------------------------------
# Cosine-similarity interaction kernel (the previously reviewed kernel):
# for each flattened row m and perspective l: cos(w[l]*v1[m], w[l]*v2[m]).
# ---------------------------------------------------------------------------
def _matching_kernel(w2t_ref, v1_ref, v2_ref, out_ref, *, eps, n_out):
    # w2t_ref : (H, Lp)  resident (w*w).T, padded cols are zero.
    # v1_ref/v2_ref : (tm, H),  out_ref : (tm, n_out)
    a = v1_ref[...]
    b = v2_ref[...]
    w2t = w2t_ref[...]

    # Products stay in the input dtype (bf16 MXU feed on the bf16 path);
    # the three matmuls share the same resident RHS, f32 accumulation.
    dot = jnp.dot(a * b, w2t, preferred_element_type=jnp.float32)     # (tm, Lp)
    n1sq = jnp.dot(a * a, w2t, preferred_element_type=jnp.float32)
    n2sq = jnp.dot(b * b, w2t, preferred_element_type=jnp.float32)

    eps2 = jnp.float32(eps) * jnp.float32(eps)
    inv = lax.rsqrt(jnp.maximum(n1sq, eps2)) * lax.rsqrt(jnp.maximum(n2sq, eps2))
    res = dot * inv
    out_ref[...] = res[:, :n_out].astype(out_ref.dtype)


def matching_forward(w, v1, v2, *, eps=1e-8, target_tm=4096, input_dtype=None):
    """Cosine similarity of w-scaled v1/v2 along the hidden dim -> (B, S, L)."""
    B, S, H = v1.shape
    L, H2 = w.shape
    assert H == H2
    M = B * S
    Lp = _round_up(L, 128)

    in_dtype = jnp.dtype(input_dtype) if input_dtype is not None else jnp.dtype(v1.dtype)
    min_tile = _min_row_tile(in_dtype.itemsize)

    # Stream inputs as-is (no HBM-side padding); cast only if explicitly asked.
    v1f = v1.reshape(M, H)
    v2f = v2.reshape(M, H)
    if v1f.dtype != in_dtype:
        v1f = v1f.astype(in_dtype)
    if v2f.dtype != in_dtype:
        v2f = v2f.astype(in_dtype)

    # Hoisted: (w*w).T computed once in the wrapper, lane-padded to Lp with
    # zeros (padded columns contribute nothing and are sliced off in-kernel).
    w_f32 = w.astype(jnp.float32)
    w2t = jnp.zeros((H, Lp), jnp.float32).at[:, :L].set((w_f32 * w_f32).T)
    if in_dtype != jnp.float32:
        w2t = w2t.astype(in_dtype)

    per_row = (2 * 2 * H * in_dtype.itemsize   # double-buffered v1/v2 tiles
               + 2 * L * 4                     # double-buffered output tile
               + 6 * H * 4 + 6 * Lp * 4)       # in-kernel temporaries (upper bound)
    resident = 2 * H * Lp * 4
    tm = _pick_tm(M, per_row, resident_bytes=resident,
                  min_tile=min_tile, target_tm=target_tm)

    out = pl.pallas_call(
        functools.partial(_matching_kernel, eps=eps, n_out=L),
        out_shape=jax.ShapeDtypeStruct((M, L), jnp.float32),
        grid_spec=pltpu.PrefetchScalarGridSpec(
            num_scalar_prefetch=0,
            grid=(_cdiv(M, tm),),
            in_specs=[
                pl.BlockSpec((H, Lp), lambda i: (0, 0)),   # resident (w*w).T
                pl.BlockSpec((tm, H), lambda i: (i, 0)),   # v1 row tile
                pl.BlockSpec((tm, H), lambda i: (i, 0)),   # v2 row tile
            ],
            out_specs=pl.BlockSpec((tm, L), lambda i: (i, 0)),
        ),
        compiler_params=pltpu.CompilerParams(
            dimension_semantics=("parallel",),
            vmem_limit_bytes=_vmem_limit_bytes()),
    )(w2t, v1f, v2f)
    return out.reshape(B, S, L)


# ---------------------------------------------------------------------------
# DIIN HighWay sub-module kernel:
#   out = sigmoid(x@wt + bt) * relu(x@wh + bh) + (1 - sigmoid(x@wt + bt)) * x
# with wh/wt fused into one resident (H, 2H) RHS -> one matmul per row tile.
# ---------------------------------------------------------------------------
def _highway_kernel(wcat_ref, bcat_ref, x_ref, out_ref, *, hid):
    x = x_ref[...]                                                    # (tm, H)
    y = jnp.dot(x, wcat_ref[...], preferred_element_type=jnp.float32)
    y = y + bcat_ref[...]                                             # (tm, 2H)
    h = y[:, :hid]
    t = jax.nn.sigmoid(y[:, hid:])
    x32 = x.astype(jnp.float32)
    out_ref[...] = (t * jnp.maximum(h, 0.0) + (1.0 - t) * x32).astype(out_ref.dtype)


def highway_forward(x, wh, bh, wt, bt, *, target_tm=4096, input_dtype=None):
    """HighWay: sigmoid(x@wt+bt)*relu(x@wh+bh) + (1-sigmoid)*x, x: (B,S,H)."""
    B, S, H = x.shape
    assert wh.shape == (H, H) and wt.shape == (H, H)
    M = B * S

    in_dtype = jnp.dtype(input_dtype) if input_dtype is not None else jnp.dtype(x.dtype)
    min_tile = _min_row_tile(in_dtype.itemsize)

    xf = x.reshape(M, H)
    if xf.dtype != in_dtype:
        xf = xf.astype(in_dtype)

    # Fused resident RHS (H, 2H): [wh | wt]; bias kept in f32.
    wcat = jnp.concatenate([wh.astype(jnp.float32), wt.astype(jnp.float32)], axis=1)
    if in_dtype != jnp.float32:
        wcat = wcat.astype(in_dtype)
    bcat = jnp.concatenate([bh.astype(jnp.float32), bt.astype(jnp.float32)])[None, :]

    out_dtype = x.dtype
    per_row = (2 * H * in_dtype.itemsize * 2           # double-buffered x tile
               + 2 * H * jnp.dtype(out_dtype).itemsize  # double-buffered output
               + 10 * H * 4)                            # temporaries
    resident = 2 * H * 2 * H * 4 + 2 * H * 4
    tm = _pick_tm(M, per_row, resident_bytes=resident,
                  min_tile=min_tile, target_tm=target_tm)

    out = pl.pallas_call(
        functools.partial(_highway_kernel, hid=H),
        out_shape=jax.ShapeDtypeStruct((M, H), out_dtype),
        grid_spec=pltpu.PrefetchScalarGridSpec(
            num_scalar_prefetch=0,
            grid=(_cdiv(M, tm),),
            in_specs=[
                pl.BlockSpec((H, 2 * H), lambda i: (0, 0)),   # fused weights
                pl.BlockSpec((1, 2 * H), lambda i: (0, 0)),   # fused bias
                pl.BlockSpec((tm, H), lambda i: (i, 0)),      # x row tile
            ],
            out_specs=pl.BlockSpec((tm, H), lambda i: (i, 0)),
        ),
        compiler_params=pltpu.CompilerParams(
            dimension_semantics=("parallel",),
            vmem_limit_bytes=_vmem_limit_bytes()),
    )(wcat, bcat, xf)
    return out.reshape(B, S, H)


# ---------------------------------------------------------------------------
# Pure-JAX references
# ---------------------------------------------------------------------------
def _matching_reference(w, v1, v2, eps=1e-8):
    a = w[None, None, :, :] * v1[:, :, None, :]      # (B, S, L, H)
    b = w[None, None, :, :] * v2[:, :, None, :]
    dot = jnp.sum(a * b, axis=-1)
    n1 = jnp.maximum(jnp.sqrt(jnp.sum(a * a, axis=-1)), eps)
    n2 = jnp.maximum(jnp.sqrt(jnp.sum(b * b, axis=-1)), eps)
    return dot / (n1 * n2)


def _highway_reference(x, wh, bh, wt, bt):
    t = jax.nn.sigmoid(x @ wt + bt)
    return t * jnp.maximum(x @ wh + bh, 0.0) + (1.0 - t) * x


if __name__ == "__main__":
    B, S, H, L = 2, 8, 32, 4   # batch, seq, hid_size, perspectives

    key = jax.random.PRNGKey(0)
    kw, k1, k2, kwh, kbh, kwt, kbt = jax.random.split(key, 7)

    stdv = 1.0 / math.sqrt(H)   # nn.Parameter init: uniform(-1/sqrt(H), 1/sqrt(H))
    w = jax.random.uniform(kw, (L, H), jnp.float32, minval=-stdv, maxval=stdv)
    v1 = jax.random.normal(k1, (B, S, H), jnp.float32)
    v2 = jax.random.normal(k2, (B, S, H), jnp.float32)

    # --- interaction kernel (f32 inputs) ---
    # Tolerance accounts for the MXU's default f32-matmul precision (bf16
    # passes); do not tighten.
    out = jax.block_until_ready(matching_forward(w, v1, v2))
    ref = _matching_reference(w, v1, v2)
    assert out.shape == (B, S, L), out.shape
    assert jnp.allclose(out, ref, atol=1e-2, rtol=1e-2), (
        float(jnp.max(jnp.abs(out - ref))))

    # --- bf16-storage variant (halves streamed HBM reads; looser tolerance) ---
    out_bf16 = jax.block_until_ready(
        matching_forward(w, v1, v2, input_dtype=jnp.bfloat16))
    assert jnp.allclose(out_bf16, ref, atol=7e-2, rtol=7e-2), (
        float(jnp.max(jnp.abs(out_bf16 - ref))))

    # --- DIIN HighWay sub-module kernel ---
    wh = jax.random.uniform(kwh, (H, H), jnp.float32, minval=-stdv, maxval=stdv)
    bh = jax.random.uniform(kbh, (H,), jnp.float32, minval=-stdv, maxval=stdv)
    wt = jax.random.uniform(kwt, (H, H), jnp.float32, minval=-stdv, maxval=stdv)
    bt = jax.random.uniform(kbt, (H,), jnp.float32, minval=-stdv, maxval=stdv)
    hw_out = jax.block_until_ready(highway_forward(v1, wh, bh, wt, bt))
    hw_ref = _highway_reference(v1, wh, bh, wt, bt)
    assert hw_out.shape == (B, S, H), hw_out.shape
    assert jnp.allclose(hw_out, hw_ref, atol=1e-2, rtol=1e-2), (
        float(jnp.max(jnp.abs(hw_out - hw_ref))))

    print("KERNEL_OK")
</pallas_src>

<mosaic_0001>
module attributes {stable_mosaic.version = 11 : i64} {
  func.func @_matching_kernel(%arg0: i32, %arg1: memref<32x128xf32, #tpu.memory_space<vmem>>, %arg2: memref<8x32xf32, #tpu.memory_space<vmem>>, %arg3: memref<8x32xf32, #tpu.memory_space<vmem>>, %arg4: memref<8x4xf32, #tpu.memory_space<vmem>>) attributes {dimension_semantics = [#tpu.dimension_semantics<parallel>], iteration_bounds = array<i64: 2>, scalar_prefetch = 0 : i64, scratch_operands = 0 : i64, tpu.core_type = #tpu.core_type<tc>, window_params = [{pipeline_mode = #tpu.pipeline_mode<synchronous>, transform_indices = @transform_0, window_bounds = array<i64: 32, 128>}, {transform_indices = @transform_1, window_bounds = array<i64: 8, 32>}, {transform_indices = @transform_2, window_bounds = array<i64: 8, 32>}, {transform_indices = @transform_3, window_bounds = array<i64: 8, 4>}]} {
    %c0 = arith.constant 0 : index
    %c0_0 = arith.constant 0 : index
    %0 = vector.load %arg2[%c0, %c0_0] : memref<8x32xf32, #tpu.memory_space<vmem>>, vector<8x32xf32>
    %c0_1 = arith.constant 0 : index
    %c0_2 = arith.constant 0 : index
    %1 = vector.load %arg3[%c0_1, %c0_2] : memref<8x32xf32, #tpu.memory_space<vmem>>, vector<8x32xf32>
    %c0_3 = arith.constant 0 : index
    %c0_4 = arith.constant 0 : index
    %2 = vector.load %arg1[%c0_3, %c0_4] : memref<32x128xf32, #tpu.memory_space<vmem>>, vector<32x128xf32>
    %3 = arith.mulf %0, %1 : vector<8x32xf32>
    %cst = arith.constant dense<0.000000e+00> : vector<8x128xf32>
    %4 = tpu.matmul %3, %2, %cst {dimension_numbers = #tpu.dot_dimension_numbers<[1], [0], [0], [1], [0, 0, 1, 1], [], []>} : vector<8x32xf32>, vector<32x128xf32>, vector<8x128xf32> -> vector<8x128xf32>
    %5 = arith.mulf %0, %0 : vector<8x32xf32>
    %cst_5 = arith.constant dense<0.000000e+00> : vector<8x128xf32>
    %6 = tpu.matmul %5, %2, %cst_5 {dimension_numbers = #tpu.dot_dimension_numbers<[1], [0], [0], [1], [0, 0, 1, 1], [], []>} : vector<8x32xf32>, vector<32x128xf32>, vector<8x128xf32> -> vector<8x128xf32>
    %7 = arith.mulf %1, %1 : vector<8x32xf32>
    %cst_6 = arith.constant dense<0.000000e+00> : vector<8x128xf32>
    %8 = tpu.matmul %7, %2, %cst_6 {dimension_numbers = #tpu.dot_dimension_numbers<[1], [0], [0], [1], [0, 0, 1, 1], [], []>} : vector<8x32xf32>, vector<32x128xf32>, vector<8x128xf32> -> vector<8x128xf32>
    %cst_7 = arith.constant 9.99999993E-9 : f32
    %cst_8 = arith.constant 9.99999993E-9 : f32
    %9 = arith.mulf %cst_7, %cst_8 : f32
    %10 = vector.broadcast %9 : f32 to vector<8x128xf32>
    %11 = arith.maximumf %6, %10 : vector<8x128xf32>
    %12 = math.rsqrt %11 : vector<8x128xf32>
    %13 = vector.broadcast %9 : f32 to vector<8x128xf32>
    %14 = arith.maximumf %8, %13 : vector<8x128xf32>
    %15 = math.rsqrt %14 : vector<8x128xf32>
    %16 = arith.mulf %12, %15 : vector<8x128xf32>
    %17 = arith.mulf %4, %16 : vector<8x128xf32>
    %18 = vector.extract_strided_slice %17 {offsets = [0, 0], sizes = [8, 4], strides = [1, 1]} : vector<8x128xf32> to vector<8x4xf32>
    %c0_9 = arith.constant 0 : index
    %c0_10 = arith.constant 0 : index
    %19 = vector.load %arg4[%c0_9, %c0_10] : memref<8x4xf32, #tpu.memory_space<vmem>>, vector<8x4xf32>
    tpu.vector_store %arg4[%c0_9, %c0_10], %18 {strides = array<i32>} : memref<8x4xf32, #tpu.memory_space<vmem>>, vector<8x4xf32>,
    return
  }
  func.func @transform_0(%arg0: i32) -> (i32, i32) {
    %c0_i32 = arith.constant 0 : i32
    %c0_i32_0 = arith.constant 0 : i32
    %c0_i32_1 = arith.constant 0 : i32
    return %c0_i32, %c0_i32_0 : i32, i32
  }
  func.func @transform_1(%arg0: i32) -> (i32, i32) {
    %c0_i32 = arith.constant 0 : i32
    %c0_i32_0 = arith.constant 0 : i32
    return %arg0, %c0_i32 : i32, i32
  }
  func.func @transform_2(%arg0: i32) -> (i32, i32) {
    %c0_i32 = arith.constant 0 : i32
    %c0_i32_0 = arith.constant 0 : i32
    return %arg0, %c0_i32 : i32, i32
  }
  func.func @transform_3(%arg0: i32) -> (i32, i32) {
    %c0_i32 = arith.constant 0 : i32
    %c0_i32_0 = arith.constant 0 : i32
    return %arg0, %c0_i32 : i32, i32
  }
}

</mosaic_0001>

<bundles_post_ra>
// kernel: tpu_custom_call.1
= control target key start
LH: loop header
LB: loop body
LE: loop exit
PB: predicated region body
PF: predicated region fallthrough
CT: control target
= control target key end

     0   :  { %8 = vsyncpa [#allocation3], 0  ;;  %s1023_s0 = inlined_call_operand.hbm [shape: f32[32,128], index: 0, kind: input, shape index: {}]   ;;  %s1024_s1 = inlined_call_operand.hbm [shape: f32[16,32], index: 1, kind: input, shape index: {}]   ;;  %s1025_s2 = inlined_call_operand.hbm [shape: f32[16,32], index: 2, kind: input, shape index: {}]   ;;  %s1026_s3 = inlined_call_operand.vmem [shape: f32[16,4], index: 3, kind: output, shape index: {}]  }
   0x1   :  { %9 = vsyncpa [#allocation5], 0 }
   0x2   :  { %11 = vsyncpa [#allocation5 + $0x1], 0  ;;  %s847_s12 = smov 0   ;;  %s849_s13 = smov 0  }
   0x3   :  { %s851_s14 = smov 0   ;;  %s853_s15 = smov 0  }
   0x4 LB: > { %s868_s16 = sadd.s32 1, %s818_s15   ;;  %s45_s17 = sadd.s32 1, %s814_s14  ;;  %s818_s15 = sphi %s853_s15, %s1043_s15   ;;  %s814_s14 = sphi %s851_s14, %s1042_s14   ;;  %s810_s13 = sphi %s849_s13, %s1041_s13   ;;  %s806_s12 = sphi %s847_s12, %s1040_s12  }
   0x5   : > { %s42_s18 = ssub.s32 %s818_s15, %s868_s16  ;;  %p52_p0 = scmp.ne.s32.totalorder %s814_s14, %s810_s13 }
   0x6   : > { %p43_p1 = scmp.eq.s32.totalorder %s42_s18, 0  ;;  %p53_p2 = scmp.eq.s32.totalorder %s818_s15, 0 }
   0x7   : > { %p655_p3 = scmp.lt.s32.totalorder %s818_s15, 2  ;;  %s147_s20 = sand.u32 1, %s818_s15  }
   0x8   : > { %s878_s19 = scalar_select %p43_p1, %s814_s14, %s45_s17  }
   0x9   : > { %p54_p4 = por %p53_p2, %p52_p0  ;;  %s149_s21 = sand.u32 1, %s814_s14  }
   0xa   : > { %s882_s22 = sshll.u32 %s149_s21, 3  ;;  %s574_s23 = sshll.u32 %s818_s15, 7 }
   0xb   : > { %s890_s26 = scalar_lea.hbm %s1024_s1, %s574_s23  ;;  %s151_s27 = scalar_lea.vmem [#allocation4], %s882_s22 }
   0xc   : > { %s158_s28 = sshll.u32 %s151_s27, 4  ;;  %p893_p5 = pnand %p655_p3, %p54_p4  ;;  %s159_s28 = int_to_ptr.vmem [resolvable:$true] %s158_s28 }
   0xd   : > { %s897_s30 = scalar_lea.sflag [#allocation5], %s147_s20  ;;  %s698_s4 = scalar_lea.hbm %s890_s26, 128 }
   0xe   : > { %p699_p6 = scmp.ne.s32.totalorder %s890_s26, %s698_s4  ;;  %p700_p7 = pneg %p893_p5 }
   0xf   : > { %s703_s7 = scalar_lea.hbm %s1024_s1, 256  ;;  %p704_p10 = scmp.lt.s32.totalorder %s890_s26, %s1024_s1 }
  0x10   : > { %p701_p8 = pnand %p700_p7, %p699_p6  ;;  %p705_p11 = scmp.lt.s32.totalorder %s703_s7, %s698_s4 }
  0x12   : > { %p702_p9 = pneg %p701_p8  ;;  %p706_p12 = por %p705_p11, %p704_p10 }
  0x14   : > { %p707_p13 = pnand %p706_p12, %p702_p9 }
  0x16   : > { %710 = shalt.err (!%p707_p13)
}
  0x17   : > { %s711_s10 = scalar_lea.vmem %s159_s28, 128  ;;  %s820_s11 = smov [#allocation4]  }
  0x18   : > { %p712_p0 = scmp.ne.s32.totalorder %s159_s28, %s711_s10  ;;  %s716_s17 = sshll.u32 %s820_s11, 4  ;;  %s717_s17 = int_to_ptr.vmem [resolvable:$false] %s716_s17 }
  0x19   : > { %s718_s18 = scalar_lea.vmem %s717_s17, 256  ;;  %p719_p3 = scmp.lt.s32.totalorder %s159_s28, %s717_s17 }
  0x1a   : > { %p714_p1 = pnand %p712_p0, %p700_p7  ;;  %p720_p4 = scmp.lt.s32.totalorder %s718_s18, %s711_s10 }
  0x1c   : > { %p715_p2 = pneg %p714_p1  ;;  %p721_p6 = por %p720_p4, %p719_p3 }
  0x1e   : > { %p722_p8 = pnand %p721_p6, %p715_p2 }
  0x20   : > { %725 = shalt.err (!%p722_p8)
}
  0x21   : > { %650 = dma.hbm_to_vmem [thread:$0]  (!%p893_p5), %s890_s26, 128, %s159_s28, %s897_s30  }
  0x22   : > { %s921_s20 = sadd.s32 4294967295, %s818_s15   ;;  %p58_p10 = scmp.ne.s32.totalorder %s810_s13, %s806_s12 }
  0x23   : > { %p1027_p9 = scmp.eq.s32.totalorder %s921_s20, 0  ;;  %p570_p11 = scmp.ge.s32.totalorder %s818_s15, 1 }
  0x24   : > { %p121_p12 = scmp.lt.s32.totalorder %s818_s15, 3  ;;  %s821_s25 = smov [#allocation2]  }
  0x25   : > { %p930_p13 = por %p1027_p9, %p58_p10  ;;  %s133_s26 = sshll.u32 %s821_s25, 4  ;;  %s945_s26 = int_to_ptr.vmem [resolvable:$true] %s133_s26 }
  0x26   : > { %p934_p0 = pnand %p570_p11, %p121_p12  ;;  %s943_s12 = scalar_lea.hbm %s1025_s2, %s574_s23 }
  0x27   : > { %s1032_s21 = scalar_select %p930_p13, 1, 0 }
  0x28   : > { %s1033_s24 = scalar_select %p934_p0, 1, 0 }
  0x29   : > { %p643_p1 = pneg %p934_p0  ;;  %s169_s4 = scalar_lea.vmem [#allocation6], %s882_s22 }
  0x2a   : > { %s176_s5 = sshll.u32 %s169_s4, 4  ;;  %s726_s15 = scalar_lea.hbm %s943_s12, 128  ;;  %s177_s5 = int_to_ptr.vmem [resolvable:$true] %s176_s5 }
  0x2b   : > { %p952_p2 = pnand %p643_p1, %p1027_p9  ;;  %p727_p3 = scmp.ne.s32.totalorder %s943_s12, %s726_s15 }
  0x2c   : > { %s731_s8 = scalar_lea.hbm %s1025_s2, 256  ;;  %p732_p8 = scmp.lt.s32.totalorder %s943_s12, %s1025_s2 }
  0x2d   : > { %s1034_s6 = scalar_select %p952_p2, 1, 0 }
  0x2e   : > { %p729_p4 = pnand %p727_p3, %p700_p7  ;;  %p733_p10 = scmp.lt.s32.totalorder %s731_s8, %s726_s15 }
  0x30   : > { %p730_p6 = pneg %p729_p4  ;;  %p734_p11 = por %p733_p10, %p732_p8 }
  0x32   : > { %p735_p12 = pnand %p734_p11, %p730_p6 }
  0x34   : > { %738 = shalt.err (!%p735_p12)
}
  0x35   : > { %s739_s22 = scalar_lea.vmem %s177_s5, 128  ;;  %s822_s11 = smov [#allocation6]  }
  0x36   : > { %p740_p1 = scmp.ne.s32.totalorder %s177_s5, %s739_s22  ;;  %s744_s17 = sshll.u32 %s822_s11, 4  ;;  %s745_s17 = int_to_ptr.vmem [resolvable:$false] %s744_s17 }
  0x37   : > { %s746_s18 = scalar_lea.vmem %s745_s17, 256  ;;  %p747_p4 = scmp.lt.s32.totalorder %s177_s5, %s745_s17 }
  0x38   : > { %p742_p9 = pnand %p740_p1, %p700_p7  ;;  %p748_p13 = scmp.lt.s32.totalorder %s746_s18, %s739_s22 }
  0x3a   : > { %p743_p3 = pneg %p742_p9  ;;  %p749_p0 = por %p748_p13, %p747_p4 }
  0x3c   : > { %p750_p2 = pnand %p749_p0, %p743_p3 }
  0x3e   : > { %753 = shalt.err (!%p750_p2)
}
  0x3f   : > { %653 = dma.hbm_to_vmem [thread:$0]  (!%p893_p5), %s943_s12, 128, %s177_s5, %s897_s30  }
  0x40   : > { %p1035_p7 = scmp.ne.s32.totalorder %s1034_s6, 0  ;;  %s765_s25 = scalar_lea.vmem %s945_s26, 512 }
  0x41   : > { %p766_p6 = scmp.ne.s32.totalorder %s945_s26, %s765_s25  ;;  %p773_p11 = scmp.lt.s32.totalorder %s945_s26, %s945_s26 }
  0x42   : > { %p756_p9 = pneg %p1035_p7  ;;  %p774_p13 = scmp.lt.s32.totalorder %s765_s25, %s765_s25 }
  0x44   : > { %p768_p8 = pnand %p766_p6, %p756_p9  ;;  %p775_p0 = por %p774_p13, %p773_p11 }
  0x46   : > { %p769_p10 = pneg %p768_p8 }
  0x48   : > { %p776_p2 = pnand %p775_p0, %p769_p10 }
  0x4a   : > { %779 = shalt.err (!%p776_p2)
}
  0x4b   : > { %s823_s29 = smov 128   ;;  %s824_s27 = smov 8  }
  0x4c   : > { %646 = dma.hbm_to_vmem [thread:$0]  (!%p1035_p7), %s1023_s0, 512, %s945_s26, [#allocation3], %s823_s29, %s823_s29, %s824_s27  }
  0x4d   : > { %p1036_p5 = scmp.ne.s32.totalorder %s1033_s24, 0 }
  0x4e   : > { %p1037_p12 = scmp.eq.s32.totalorder (!%p1036_p5), %s921_s20, 0 }
  0x4f   : > { %185 = sbr.rel (%p1036_p5) target bundleno = 322 (0x142), region = 32 }
  0x54   : > { %797 = dma.done.wait (%p1037_p12), [#allocation3], 512   ;;  %p1038_p1 = pmov %p1037_p12 }
  0x55   : > { %s191_s30 = sand.u32 1, %s921_s20   ;;  %s193_s12 = sand.u32 1, %s810_s13  }
  0x56   : > { %799 = vsyncadd (%p1038_p1), [#allocation3], 4294966784  ;;  %s579_s5 = sshll.u32 %s193_s12, 3  ;;  %s192_s6 = scalar_lea.sflag [#allocation5], %s191_s30 }
  0x57   : > { %s195_s15 = scalar_lea.vmem [#allocation4], %s579_s5  ;;  %p1039_p3 = scmp.ne.s32.totalorder %s1032_s21, 0 }
  0x59   : > { %801 = dma.done.wait (%p1039_p3), %s192_s6, 256  }
  0x5a   : > { %803 = vsyncadd (%p1039_p3), %s192_s6, 4294967040  ;;  %v825_v0 = vmov 0.0   ;;  %vm826_vm0 = vmmov 0   ;;  %v240_v1 = vld [vmem:[#allocation2 + $0x18] sm:$0xff]  ;;  %v239_v2 = vld [vmem:[#allocation2 + $0x10] sm:$0xff]  ;;  %s204_s24 = scalar_lea.vmem [#allocation6], %s579_s5 }
  0x5b   : > { %602 = vmatprep.subr.mxu0 %v825_v0  ;;  %613 = vmatprep.subr.mxu1 %v825_v0  ;;  %v235_v3 = vld [vmem:[%s195_s15] sm:$0xff]  ;;  %v236_v4 = vld [vmem:[%s204_s24] sm:$0xff]  ;;  %vm242_vm1 = vcmask 261120   ;;  %p231_p4 = scmp.lt.s32.totalorder %s921_s20, 1  ;;  %vm470_vm2 = vcmask 31744  }
  0x5c   : > { %610 = vmatprep.mubr.msk.f32.mxu0 %vm826_vm0, %v825_v0  ;;  %621 = vmatprep.mubr.msk.f32.mxu1 %vm826_vm0, %v825_v0  ;;  %v238_v5 = vld [vmem:[#allocation2 + $0x8] sm:$0xff]  ;;  %v237_v6 = vld [vmem:[#allocation2] sm:$0xff]  ;;  %v241_v7 = vmul.f32 %v236_v4, %v235_v3  ;;  %v316_v8 = vmul.f32 %v235_v3, %v235_v3  ;;  %v390_v9 = vmul.f32 %v236_v4, %v236_v4 }
  0x5d   : > { %603 = vmatpush3.msra.mxu0 %v240_v1  ;;  %614 = vmatpush3.msra.mxu1 %v240_v1  ;;  %s1045_s20 = smov (!%p231_p4, %s921_s20), 1 }
  0x5e   : > { %604 = vmatprep.subr.mxu0 %v825_v0  ;;  %615 = vmatprep.subr.mxu1 %v825_v0  ;;  %s581_s21 = sshll.u32 %s1045_s20, 3 }
  0x5f   : > { %605 = vmatpush3.msra.mxu0 %v239_v2  ;;  %616 = vmatpush3.msra.mxu1 %v239_v2  ;;  %s234_s7 = scalar_lea.vmem %s1026_s3, %s581_s21 }
  0x60   : > { %606 = vmatprep.subr.mxu0 %v825_v0  ;;  %617 = vmatprep.subr.mxu1 %v825_v0 }
  0x61   : > { %607 = vmatpush3.msra.mxu0 %v238_v5  ;;  %618 = vmatpush3.msra.mxu1 %v238_v5 }
  0x62   : > { %608 = vmatprep.subr.mxu0 %v825_v0  ;;  %619 = vmatprep.subr.mxu1 %v825_v0 }
  0x63   : > { %609 = vmatpush3.msra.mxu0 %v237_v6  ;;  %620 = vmatpush3.msra.mxu1 %v237_v6 }
  0x64   : > { %611 = vmatmul.mubr.msk.f32.vlgmr.msra.gmra.mxu0 %vm242_vm1, %v241_v7  ;;  %624 = vmatprep.subr.mxu0 %v825_v0 }
  0x65   : > { %625 = vmatpush3.msra.mxu0 %v240_v1  ;;  %622 = vmatmul.mubr.msk.f32.vlgmr.msra.gmra.mxu1 %vm242_vm1, %v316_v8 }
  0x66   : > { %626 = vmatprep.subr.mxu0 %v825_v0  ;;  %632 = vmatprep.mubr.msk.f32.mxu0 %vm826_vm0, %v825_v0 }
  0x67   : > { %627 = vmatpush3.msra.mxu0 %v239_v2 }
  0x68   : > { %628 = vmatprep.subr.mxu0 %v825_v0 }
  0x69   : > { %629 = vmatpush3.msra.mxu0 %v238_v5 }
  0x6a   : > { %630 = vmatprep.subr.mxu0 %v825_v0 }
  0x6b   : > { %631 = vmatpush3.msra.mxu0 %v237_v6 }
  0x6c   : > { %633 = vmatmul.mubr.msk.f32.vlgmr.msra.gmra.mxu0 %vm242_vm1, %v390_v9 }
 0x124   : > { %v312_v10 = vpop.f32.mrf.mxu0 }
 0x125   : > { %v386_v11 = vpop.f32.mrf.mxu1 }
 0x126   : > { %v612_v12 = vpop.f32.mrf.mxu0  ;;  %v464_v14 = vmax.f32 %v386_v11, 1e-16 }
 0x127   : > { %v623_v13 = vpop.f32.mrf.mxu1 }
 0x128   : > { %694 = vrsqrt.f32 %v464_v14 }
 0x12c   : > { %v460_v15 = vpop.f32.mrf.mxu0 }
 0x12d   : > { %v466_v16 = vmax.f32 %v460_v15, 1e-16 }
 0x12e   : > { %v634_v17 = vpop.f32.mrf.mxu0 }
 0x12f   : > { %696 = vrsqrt.f32 %v466_v16 }
 0x135   : > { %v695_v18 = vpop.eup %694 }
 0x13c   : > { %v697_v19 = vpop.eup %696 }
 0x13d   : > { %v468_v20 = vmul.f32 %v697_v19, %v695_v18 }
 0x13f   : > { %v469_v21 = vmul.f32 %v468_v20, %v312_v10 }
 0x141   : > { %471 = vst.msk [vmem:[%s234_s7] sm:$0xff] %vm470_vm2, %v469_v21 }
 0x142 PF: > { %p14_p7 = scmp.ge.s32.totalorder %s868_s16, 4   ;;  %s1040_s12 = smov %s810_s13 }
 0x143   : > { %s1041_s13 = smov %s814_s14  ;;  %s1042_s14 = smov %s878_s19 }
 0x144   : > { %s1043_s15 = smov %s868_s16  ;;  %16 = sbr.rel (!%p14_p7) target bundleno = 4 (0x4), region = 88 }
 0x149   :  { %491 = vsyncpa [#allocation3], 1 }
 0x14a   :  { %493 = vsyncpa [#allocation3 + $0x1], 1 }
 0x14b   :  { %494 = vsyncpa [#allocation5], 1 }
 0x14c   :  { %496 = vsyncpa [#allocation5 + $0x1], 1 }

</bundles_post_ra>
